<compile_context>
chip_gen: v7x
topology: tpu7x:2x2x1
jax: 0.10.0
libtpu: 0.0.40
codegen_flags: <defaults>
</compile_context>

<pallas_src>
import functools

import numpy as np
import jax
import jax.numpy as jnp
from jax import lax
from jax.experimental import pallas as pl
from jax.experimental.pallas import tpu as pltpu


def _round_up(x: int, m: int) -> int:
    return (x + m - 1) // m * m


# ---------------------------------------------------------------------------
# Pallas kernel: fused 1x1 conv (channel matmul, BN scale pre-folded into the
# weights) + bias + ReLU on one (batch, lane-tile) block.
# ---------------------------------------------------------------------------
def fourier_unit_kernel(re_ref, im_ref, wre_ref, wim_ref, bias_ref, o_ref):
    # re/im: (C_in, TN)   wre/wim: (2*C_out, C_in)   bias: (2*C_out, 1)
    # o:     (2*C_out, TN)  rows [:C_out] = real outputs, rows [C_out:] = imag.
    z = jnp.dot(wre_ref[...], re_ref[...],
                preferred_element_type=jnp.float32,
                precision=lax.Precision.HIGHEST)
    z = z + jnp.dot(wim_ref[...], im_ref[...],
                    preferred_element_type=jnp.float32,
                    precision=lax.Precision.HIGHEST)
    o_ref[...] = jnp.maximum(z + bias_ref[...], 0.0)     # folded-BN bias + ReLU


def _fused_conv_bn_relu(re, im, w_from_re, w_from_im, bias, *, lane_tile):
    """re/im: (B, C_in, Npad) f32 (Npad % 128 == 0); weights: (2*C_out, C_in)."""
    b, c_in, n_pad = re.shape
    c_out2 = w_from_re.shape[0]
    assert n_pad % 128 == 0 and lane_tile % 128 == 0

    # --- VMEM-aware lane tile -------------------------------------------------
    # Per grid step the pipeline double-buffers the re/im input tiles and the
    # output tile, plus the (resident, double-buffered) weights/bias.  Budget
    # 40 MiB so tiles also fit v7x (64 MiB physical VMEM); v5e/v6e have slack.
    vmem_budget = 40 * 1024 * 1024
    weight_bytes = 2 * (2 * c_out2 * c_in + c_out2) * 4      # 2 weights + bias, x2 buffers
    lane_bytes = 2 * (2 * c_in + c_out2) * 4                 # per lane column, x2 buffers
    tn_cap = max(128, ((vmem_budget - weight_bytes) // lane_bytes) // 128 * 128)
    tn = min(lane_tile, tn_cap, n_pad)
    if b == 1:
        # Guarantee >=2 grid steps on the parallel axes so both v7x TCs get work.
        tn = min(tn, _round_up(pl.cdiv(n_pad, 2), 128))
    grid = (b, pl.cdiv(n_pad, tn))      # last lane tile may be partial (masked stores)

    # Raise the scoped-VMEM limit only when the tile actually needs it.
    needed = lane_bytes * tn + weight_bytes + (2 << 20)
    vmem_limit = min(48 * 1024 * 1024, needed)
    vmem_limit = vmem_limit if vmem_limit > (16 * 1024 * 1024) else None

    # Memory-bound hint for the XLA scheduler (flops are negligible here).
    flops = 2 * 2 * c_out2 * c_in * b * n_pad
    bytes_accessed = 4 * (2 * b * c_in * n_pad + b * c_out2 * n_pad
                          + 2 * c_out2 * c_in + c_out2)

    return pl.pallas_call(
        fourier_unit_kernel,
        out_shape=jax.ShapeDtypeStruct((b, c_out2, n_pad), jnp.float32),
        grid=grid,
        in_specs=[
            pl.BlockSpec((pl.Squeezed(), c_in, tn), lambda bi, j: (bi, 0, j)),  # re
            pl.BlockSpec((pl.Squeezed(), c_in, tn), lambda bi, j: (bi, 0, j)),  # im
            pl.BlockSpec((c_out2, c_in), lambda bi, j: (0, 0)),   # W_from_re (resident)
            pl.BlockSpec((c_out2, c_in), lambda bi, j: (0, 0)),   # W_from_im (resident)
            pl.BlockSpec((c_out2, 1), lambda bi, j: (0, 0)),      # folded-BN bias
        ],
        out_specs=pl.BlockSpec((pl.Squeezed(), c_out2, tn), lambda bi, j: (bi, 0, j)),
        compiler_params=pltpu.CompilerParams(
            dimension_semantics=("parallel", "parallel"),         # batch x lane tiles
            vmem_limit_bytes=vmem_limit),
        cost_estimate=pl.CostEstimate(flops=flops, transcendentals=0,
                                      bytes_accessed=bytes_accessed),
    )(re, im, w_from_re, w_from_im, bias)


# ---------------------------------------------------------------------------
# Full FourierUnit forward (Pallas path).  Eval-mode BN (running stats) only.
# ---------------------------------------------------------------------------
@functools.partial(jax.jit, static_argnames=("eps", "lane_tile"))
def fourier_unit_pallas(x, conv_w, bn_gamma, bn_beta, bn_mean, bn_var,
                        *, eps=1e-5, lane_tile=32768):
    B, Cin, H, W = x.shape
    Cout2 = conv_w.shape[0]
    Cout = Cout2 // 2
    assert conv_w.shape[1] == 2 * Cin and Cout2 % 2 == 0

    # TODO(synk): FFT has no Pallas primitive on TPU; rfftn/irfftn stay in XLA.
    f = jnp.fft.rfftn(x, axes=(-2, -1), norm='ortho')         # (B, Cin, H, Wf) c64
    Wf = f.shape[-1]
    N = H * Wf
    n_pad = _round_up(N, 128)

    # --- constant-weight preprocessing (tiny) --------------------------------
    # PyTorch interleaves (real, imag): in-chan 2i -> Re(chan i), 2i+1 -> Im;
    # out-chan 2o -> Re(out o), 2o+1 -> Im(out o).
    w4 = conv_w.reshape(Cout, 2, Cin, 2)                      # [o, q, i, p] = w[2o+q, 2i+p]
    w_from_re = jnp.concatenate([w4[:, 0, :, 0], w4[:, 1, :, 0]], axis=0)  # (2*Cout, Cin)
    w_from_im = jnp.concatenate([w4[:, 0, :, 1], w4[:, 1, :, 1]], axis=0)

    # Fold BatchNorm (eval mode) into scale/bias, de-interleaved to match the
    # [real rows ; imag rows] output layout; fold the scale into the weights.
    scale = bn_gamma * lax.rsqrt(bn_var + eps)
    bias = bn_beta - bn_mean * scale
    scale_de = jnp.concatenate([scale[0::2], scale[1::2]]).reshape(Cout2, 1)
    bias_de = jnp.concatenate([bias[0::2], bias[1::2]]).reshape(Cout2, 1)
    w_from_re = w_from_re * scale_de
    w_from_im = w_from_im * scale_de

    # --- data layout: no HBM transpose ---------------------------------------
    # (B, Cin, H, Wf) -> (B, Cin, H*Wf) is a free reshape; pad only the last
    # (lane) axis to a 128-multiple (fuses with the real/imag extraction).
    pad = ((0, 0), (0, 0), (0, n_pad - N))
    re = jnp.pad(jnp.real(f).reshape(B, Cin, N), pad)
    im = jnp.pad(jnp.imag(f).reshape(B, Cin, N), pad)

    o = _fused_conv_bn_relu(re, im, w_from_re, w_from_im, bias_de,
                            lane_tile=lane_tile)              # (B, 2*Cout, n_pad)

    # Padded frequency columns are nonzero after bias+ReLU -> slice them off
    # before the inverse FFT.
    o_re = o[:, :Cout, :N].reshape(B, Cout, H, Wf)
    o_im = o[:, Cout:, :N].reshape(B, Cout, H, Wf)
    oc = lax.complex(o_re, o_im)                              # (B, Cout, H, Wf)
    return jnp.fft.irfftn(oc, s=(H, W), axes=(-2, -1), norm='ortho')


# ---------------------------------------------------------------------------
# Pure-JAX reference that mirrors the PyTorch FourierUnit.forward literally
# (interleaved real/imag channels, 1x1 conv, eval-mode BN, ReLU, irfft).
# ---------------------------------------------------------------------------
@jax.jit
def fourier_unit_ref(x, conv_w, bn_gamma, bn_beta, bn_mean, bn_var, eps=1e-5):
    B, Cin, H, W = x.shape
    f = jnp.fft.rfftn(x, axes=(-2, -1), norm='ortho')
    st = jnp.stack([jnp.real(f), jnp.imag(f)], axis=-1)       # (B, C, H, Wf, 2)
    st = jnp.transpose(st, (0, 1, 4, 2, 3)).reshape(B, 2 * Cin, H, -1)
    z = jnp.einsum('oi,bihw->bohw', conv_w, st,
                   precision=lax.Precision.HIGHEST)           # 1x1 conv, bias=False
    inv_std = lax.rsqrt(bn_var + eps)
    z = (z - bn_mean[None, :, None, None]) * inv_std[None, :, None, None]
    z = z * bn_gamma[None, :, None, None] + bn_beta[None, :, None, None]
    z = jnp.maximum(z, 0.0)
    Cout2 = z.shape[1]
    z = jnp.transpose(z.reshape(B, Cout2 // 2, 2, H, z.shape[-1]), (0, 1, 3, 4, 2))
    oc = lax.complex(z[..., 0], z[..., 1])
    return jnp.fft.irfftn(oc, s=(H, W), axes=(-2, -1), norm='ortho')


if __name__ == "__main__":
    B, Cin, Cout, H, W = 2, 4, 4, 16, 16
    C2_in, C2_out = 2 * Cin, 2 * Cout

    key = jax.random.PRNGKey(0)
    kx, kw, kg, kb, km, kv = jax.random.split(key, 6)
    x = jax.random.normal(kx, (B, Cin, H, W), jnp.float32)
    # conv_layer weight (2*out_c, 2*in_c), kernel_size=1, bias=False (squeezed to 2D)
    conv_w = 0.1 * jax.random.normal(kw, (C2_out, C2_in), jnp.float32)
    # BatchNorm2d(out_c*2) parameters + running stats (inference-mode fold)
    bn_gamma = 1.0 + 0.1 * jax.random.normal(kg, (C2_out,), jnp.float32)
    bn_beta = 0.1 * jax.random.normal(kb, (C2_out,), jnp.float32)
    bn_mean = 0.1 * jax.random.normal(km, (C2_out,), jnp.float32)
    bn_var = 0.5 + jax.random.uniform(kv, (C2_out,), jnp.float32)

    out_pallas = jax.block_until_ready(
        fourier_unit_pallas(x, conv_w, bn_gamma, bn_beta, bn_mean, bn_var))
    out_ref = jax.block_until_ready(
        fourier_unit_ref(x, conv_w, bn_gamma, bn_beta, bn_mean, bn_var))

    assert out_pallas.shape == (B, Cout, H, W)
    np.testing.assert_allclose(np.asarray(out_pallas), np.asarray(out_ref),
                               rtol=1e-4, atol=1e-4)
    print("KERNEL_OK")
</pallas_src>

<mosaic_0001>
module attributes {stable_mosaic.version = 11 : i64} {
  func.func @fourier_unit_kernel(%arg0: i32, %arg1: i32, %arg2: memref<1x4x256xf32, #tpu.memory_space<vmem>>, %arg3: memref<1x4x256xf32, #tpu.memory_space<vmem>>, %arg4: memref<8x4xf32, #tpu.memory_space<vmem>>, %arg5: memref<8x4xf32, #tpu.memory_space<vmem>>, %arg6: memref<8x1xf32, #tpu.memory_space<vmem>>, %arg7: memref<1x8x256xf32, #tpu.memory_space<vmem>>) attributes {dimension_semantics = [#tpu.dimension_semantics<parallel>, #tpu.dimension_semantics<parallel>], iteration_bounds = array<i64: 2, 1>, scalar_prefetch = 0 : i64, scratch_operands = 0 : i64, tpu.core_type = #tpu.core_type<tc>, window_params = [{transform_indices = @transform_0, window_bounds = array<i64: 1, 4, 256>}, {transform_indices = @transform_1, window_bounds = array<i64: 1, 4, 256>}, {pipeline_mode = #tpu.pipeline_mode<synchronous>, transform_indices = @transform_2, window_bounds = array<i64: 8, 4>}, {pipeline_mode = #tpu.pipeline_mode<synchronous>, transform_indices = @transform_3, window_bounds = array<i64: 8, 4>}, {pipeline_mode = #tpu.pipeline_mode<synchronous>, transform_indices = @transform_4, window_bounds = array<i64: 8, 1>}, {transform_indices = @transform_5, window_bounds = array<i64: 1, 8, 256>}]} {
    %c0 = arith.constant 0 : index
    %c0_0 = arith.constant 0 : index
    %0 = vector.load %arg4[%c0, %c0_0] : memref<8x4xf32, #tpu.memory_space<vmem>>, vector<8x4xf32>
    %c0_1 = arith.constant 0 : index
    %c0_2 = arith.constant 0 : index
    %c0_3 = arith.constant 0 : index
    %1 = vector.load %arg2[%c0_1, %c0_2, %c0_3] : memref<1x4x256xf32, #tpu.memory_space<vmem>>, vector<1x4x256xf32>
    %2 = vector.shape_cast %1 : vector<1x4x256xf32> to vector<4x256xf32>
    %cst = arith.constant dense<0.000000e+00> : vector<8x256xf32>
    %3 = tpu.matmul %0, %2, %cst {dimension_numbers = #tpu.dot_dimension_numbers<[1], [0], [0], [1], [0, 0, 1, 1], [], []>, precision = #tpu.contract_precision<fp32>} : vector<8x4xf32>, vector<4x256xf32>, vector<8x256xf32> -> vector<8x256xf32>
    %c0_4 = arith.constant 0 : index
    %c0_5 = arith.constant 0 : index
    %4 = vector.load %arg5[%c0_4, %c0_5] : memref<8x4xf32, #tpu.memory_space<vmem>>, vector<8x4xf32>
    %c0_6 = arith.constant 0 : index
    %c0_7 = arith.constant 0 : index
    %c0_8 = arith.constant 0 : index
    %5 = vector.load %arg3[%c0_6, %c0_7, %c0_8] : memref<1x4x256xf32, #tpu.memory_space<vmem>>, vector<1x4x256xf32>
    %6 = vector.shape_cast %5 : vector<1x4x256xf32> to vector<4x256xf32>
    %cst_9 = arith.constant dense<0.000000e+00> : vector<8x256xf32>
    %7 = tpu.matmul %4, %6, %cst_9 {dimension_numbers = #tpu.dot_dimension_numbers<[1], [0], [0], [1], [0, 0, 1, 1], [], []>, precision = #tpu.contract_precision<fp32>} : vector<8x4xf32>, vector<4x256xf32>, vector<8x256xf32> -> vector<8x256xf32>
    %8 = arith.addf %3, %7 : vector<8x256xf32>
    %c0_10 = arith.constant 0 : index
    %c0_11 = arith.constant 0 : index
    %9 = vector.load %arg6[%c0_10, %c0_11] : memref<8x1xf32, #tpu.memory_space<vmem>>, vector<8x1xf32>
    %10 = vector.broadcast %9 : vector<8x1xf32> to vector<8x256xf32>
    %11 = arith.addf %8, %10 : vector<8x256xf32>
    %cst_12 = arith.constant 0.000000e+00 : f32
    %12 = vector.broadcast %cst_12 : f32 to vector<8x256xf32>
    %13 = arith.maximumf %11, %12 : vector<8x256xf32>
    %c0_13 = arith.constant 0 : index
    %c0_14 = arith.constant 0 : index
    %c0_15 = arith.constant 0 : index
    %14 = vector.load %arg7[%c0_13, %c0_14, %c0_15] : memref<1x8x256xf32, #tpu.memory_space<vmem>>, vector<1x8x256xf32>
    %15 = vector.shape_cast %14 : vector<1x8x256xf32> to vector<8x256xf32>
    %16 = vector.shape_cast %13 : vector<8x256xf32> to vector<1x8x256xf32>
    tpu.vector_store %arg7[%c0_13, %c0_14, %c0_15], %16 {strides = array<i32>} : memref<1x8x256xf32, #tpu.memory_space<vmem>>, vector<1x8x256xf32>,
    return
  }
  func.func @transform_0(%arg0: i32, %arg1: i32) -> (i32, i32, i32) {
    %c0_i32 = arith.constant 0 : i32
    %c0_i32_0 = arith.constant 0 : i32
    return %arg0, %c0_i32, %arg1 : i32, i32, i32
  }
  func.func @transform_1(%arg0: i32, %arg1: i32) -> (i32, i32, i32) {
    %c0_i32 = arith.constant 0 : i32
    %c0_i32_0 = arith.constant 0 : i32
    return %arg0, %c0_i32, %arg1 : i32, i32, i32
  }
  func.func @transform_2(%arg0: i32, %arg1: i32) -> (i32, i32) {
    %c0_i32 = arith.constant 0 : i32
    %c0_i32_0 = arith.constant 0 : i32
    %c0_i32_1 = arith.constant 0 : i32
    return %c0_i32, %c0_i32_0 : i32, i32
  }
  func.func @transform_3(%arg0: i32, %arg1: i32) -> (i32, i32) {
    %c0_i32 = arith.constant 0 : i32
    %c0_i32_0 = arith.constant 0 : i32
    %c0_i32_1 = arith.constant 0 : i32
    return %c0_i32, %c0_i32_0 : i32, i32
  }
  func.func @transform_4(%arg0: i32, %arg1: i32) -> (i32, i32) {
    %c0_i32 = arith.constant 0 : i32
    %c0_i32_0 = arith.constant 0 : i32
    %c0_i32_1 = arith.constant 0 : i32
    return %c0_i32, %c0_i32_0 : i32, i32
  }
  func.func @transform_5(%arg0: i32, %arg1: i32) -> (i32, i32, i32) {
    %c0_i32 = arith.constant 0 : i32
    %c0_i32_0 = arith.constant 0 : i32
    return %arg0, %c0_i32, %arg1 : i32, i32, i32
  }
}

</mosaic_0001>

<bundles_post_ra>
// kernel: reverse.0
= control target key start
LH: loop header
LB: loop body
LE: loop exit
PB: predicated region body
PF: predicated region fallthrough
CT: control target
= control target key end

     0   :  { %v71_v3 = vlaneseq  ;;  %v64_v9 = vld [vmem:[#allocation0 + $0x7] ss:$-1 sm:$0xff]  ;;  %v78_v12 = vld [vmem:[#allocation0 + $0x17] ss:$-1 sm:$0xff]  ;;  %s329_s0 = inlined_call_operand.vmem [shape: f32[2,4,16,7], index: 0, kind: input, shape index: {}]   ;;  %s330_s1 = inlined_call_operand.vmem [shape: f32[2,4,16,7], index: 1, kind: output, shape index: {}]  }
   0x1   :  { %v44_v0 = vld [vmem:[%s329_s0] sm:$0xff]  ;;  %v46_v1 = vld [vmem:[%s329_s0 + $0x8] sm:$0xff]  ;;  %v48_v2 = vld [vmem:[%s329_s0 + $0x10] sm:$0xff]  ;;  %v65_v10 = vrot.slane %v64_v9, 1  ;;  %v79_v14 = vrot.slane %v78_v12, 1 }
   0x2   :  { %45 = vst [vmem:[#allocation0 + $0x8] sm:$0xff] %v44_v0  ;;  %47 = vst [vmem:[#allocation0 + $0x18] sm:$0xff] %v46_v1  ;;  %v50_v4 = vld [vmem:[%s329_s0 + $0x18] sm:$0xff]  ;;  %v52_v5 = vld [vmem:[%s329_s0 + $0x20] sm:$0xff]  ;;  %v72_v11 = vshrl.u32 %v71_v3, 7 }
   0x3   :  { %49 = vst [vmem:[#allocation0 + $0x28] sm:$0xff] %v48_v2  ;;  %v54_v6 = vld [vmem:[%s329_s0 + $0x28] sm:$0xff]  ;;  %51 = vst [vmem:[#allocation0 + $0x38] sm:$0xff] %v50_v4  ;;  %v56_v7 = vld [vmem:[%s329_s0 + $0x30] sm:$0xff] }
   0x4   :  { %53 = vst [vmem:[#allocation0 + $0x48] sm:$0xff] %v52_v5  ;;  %55 = vst [vmem:[#allocation0 + $0x58] sm:$0xff] %v54_v6  ;;  %v58_v8 = vld [vmem:[%s329_s0 + $0x38] sm:$0xff]  ;;  %v92_v13 = vld [vmem:[#allocation0 + $0x27] ss:$-1 sm:$0xff]  ;;  %vm73_vm0 = vcmp.lt.s32.totalorder %v72_v11, 7 }
   0x5   :  { %57 = vst [vmem:[#allocation0 + $0x68] sm:$0xff] %v56_v7  ;;  %59 = vst [vmem:[#allocation0 + $0x78] sm:$0xff] %v58_v8  ;;  %v93_v15 = vrot.slane %v92_v13, 1  ;;  %v106_v16 = vld [vmem:[#allocation0 + $0x37] ss:$-1 sm:$0xff] }
   0x6   :  { %66 = vst [vmem:[#allocation1] sm:$0xff] %v65_v10  ;;  %v107_v17 = vrot.slane %v106_v16, 1  ;;  %v120_v18 = vld [vmem:[#allocation0 + $0x47] ss:$-1 sm:$0xff]  ;;  %v134_v19 = vld [vmem:[#allocation0 + $0x57] ss:$-1 sm:$0xff] }
   0x7   :  { %80 = vst [vmem:[#allocation1 + $0x8] sm:$0xff] %v79_v14  ;;  %94 = vst [vmem:[#allocation1 + $0x10] sm:$0xff] %v93_v15  ;;  %v121_v20 = vrot.slane %v120_v18, 1  ;;  %v135_v21 = vrot.slane %v134_v19, 1  ;;  %v148_v22 = vld [vmem:[#allocation0 + $0x67] ss:$-1 sm:$0xff] }
   0x8   :  { %v162_v23 = vld [vmem:[#allocation0 + $0x77] ss:$-1 sm:$0xff]  ;;  %108 = vst [vmem:[#allocation1 + $0x18] sm:$0xff] %v107_v17  ;;  %v149_v24 = vrot.slane %v148_v22, 1 }
   0x9   :  { %v163_v25 = vrot.slane %v162_v23, 1  ;;  %v69_v26 = vld [vmem:[#allocation0 + $0xf] ss:$-1 sm:$0xff]  ;;  %v83_v27 = vld [vmem:[#allocation0 + $0x1f] ss:$-1 sm:$0xff]  ;;  %122 = vst [vmem:[#allocation1 + $0x20] sm:$0xff] %v121_v20 }
   0xa   :  { %v97_v28 = vld [vmem:[#allocation0 + $0x2f] ss:$-1 sm:$0xff]  ;;  %136 = vst [vmem:[#allocation1 + $0x28] sm:$0xff] %v135_v21  ;;  %v70_v29 = vrot.slane %v69_v26, 1  ;;  %v84_v30 = vrot.slane %v83_v27, 1  ;;  %150 = vst [vmem:[#allocation1 + $0x30] sm:$0xff] %v149_v24 }
   0xb   :  { %v98_v31 = vrot.slane %v97_v28, 1  ;;  %v111_v32 = vld [vmem:[#allocation0 + $0x3f] ss:$-1 sm:$0xff]  ;;  %164 = vst [vmem:[#allocation1 + $0x38] sm:$0xff] %v163_v25  ;;  %v125_v34 = vld [vmem:[#allocation0 + $0x4f] ss:$-1 sm:$0xff] }
   0xc   :  { %v112_v33 = vrot.slane %v111_v32, 1  ;;  %v139_v35 = vld [vmem:[#allocation0 + $0x5f] ss:$-1 sm:$0xff]  ;;  %74 = vst.msk [vmem:[#allocation1] sm:$0xff] %vm73_vm0, %v70_v29  ;;  %88 = vst.msk [vmem:[#allocation1 + $0x8] sm:$0xff] %vm73_vm0, %v84_v30  ;;  %v126_v36 = vrot.slane %v125_v34, 1 }
   0xd   :  { %102 = vst.msk [vmem:[#allocation1 + $0x10] sm:$0xff] %vm73_vm0, %v98_v31  ;;  %v140_v37 = vrot.slane %v139_v35, 1  ;;  %v153_v38 = vld [vmem:[#allocation0 + $0x6f] ss:$-1 sm:$0xff]  ;;  %v167_v39 = vld [vmem:[#allocation0 + $0x7f] ss:$-1 sm:$0xff] }
   0xe   :  { %116 = vst.msk [vmem:[#allocation1 + $0x18] sm:$0xff] %vm73_vm0, %v112_v33  ;;  %v154_v40 = vrot.slane %v153_v38, 1  ;;  %v168_v41 = vrot.slane %v167_v39, 1  ;;  %130 = vst.msk [vmem:[#allocation1 + $0x20] sm:$0xff] %vm73_vm0, %v126_v36 }
   0xf   :  { %144 = vst.msk [vmem:[#allocation1 + $0x28] sm:$0xff] %vm73_vm0, %v140_v37 }
  0x10   :  { %158 = vst.msk [vmem:[#allocation1 + $0x30] sm:$0xff] %vm73_vm0, %v154_v40  ;;  %172 = vst.msk [vmem:[#allocation1 + $0x38] sm:$0xff] %vm73_vm0, %v168_v41 }
  0x13   :  { %v214_v42 = vld [vmem:[#allocation1] sm:$0xff]  ;;  %v216_v43 = vld [vmem:[#allocation1 + $0x8] sm:$0xff] }
  0x14   :  { %v218_v44 = vld [vmem:[#allocation1 + $0x10] sm:$0xff]  ;;  %215 = vst [vmem:[%s330_s1] sm:$0xff] %v214_v42  ;;  %217 = vst [vmem:[%s330_s1 + $0x8] sm:$0xff] %v216_v43 }
  0x15   :  { %219 = vst [vmem:[%s330_s1 + $0x10] sm:$0xff] %v218_v44  ;;  %v220_v45 = vld [vmem:[#allocation1 + $0x18] sm:$0xff]  ;;  %v222_v46 = vld [vmem:[#allocation1 + $0x20] sm:$0xff] }
  0x16   :  { %221 = vst [vmem:[%s330_s1 + $0x18] sm:$0xff] %v220_v45  ;;  %v224_v47 = vld [vmem:[#allocation1 + $0x28] sm:$0xff]  ;;  %223 = vst [vmem:[%s330_s1 + $0x20] sm:$0xff] %v222_v46 }
  0x17   :  { %225 = vst [vmem:[%s330_s1 + $0x28] sm:$0xff] %v224_v47  ;;  %v226_v48 = vld [vmem:[#allocation1 + $0x30] sm:$0xff]  ;;  %v228_v49 = vld [vmem:[#allocation1 + $0x38] sm:$0xff] }
  0x18   :  { %227 = vst [vmem:[%s330_s1 + $0x30] sm:$0xff] %v226_v48  ;;  %229 = vst [vmem:[%s330_s1 + $0x38] sm:$0xff] %v228_v49 }

// kernel: fourier_unit_pallas.1
= control target key start
LH: loop header
LB: loop body
LE: loop exit
PB: predicated region body
PF: predicated region fallthrough
CT: control target
= control target key end

     0   :  { %s1494_s18 = smov 0   ;;  %s1496_s19 = smov 0   ;;  %s1593_s0 = inlined_call_operand.vmem [shape: f32[2,4,256], index: 0, kind: input, shape index: {}]   ;;  %s1594_s1 = inlined_call_operand.vmem [shape: f32[2,4,256], index: 1, kind: input, shape index: {}]   ;;  %s1595_s2 = inlined_call_operand.vmem [shape: f32[8,4], index: 2, kind: input, shape index: {}]   ;;  %s1596_s3 = inlined_call_operand.vmem [shape: f32[8,4], index: 3, kind: input, shape index: {}]   ;;  %s1597_s4 = inlined_call_operand.vmem [shape: f32[8,1], index: 4, kind: input, shape index: {}]   ;;  %s1598_s5 = inlined_call_operand.vmem [shape: f32[2,8,256], index: 5, kind: output, shape index: {}]  }
   0x1   :  { %s1498_s20 = smov 0  }
   0x2 LB: > { %s27_s21 = sadd.s32 1, %s1456_s19  ;;  %p1375_p0 = scmp.ge.s32.totalorder %s1460_s20, 1  ;;  %s1460_s20 = sphi %s1498_s20, %s15_s20   ;;  %s1456_s19 = sphi %s1496_s19, %s1600_s19   ;;  %s1452_s18 = sphi %s1494_s18, %s1599_s18  }
   0x3   : > { %p29_p1 = scmp.ge.s32.totalorder %s27_s21, 2  ;;  %p225_p2 = scmp.lt.s32.totalorder %s1460_s20, 3 }
   0x5   : > { %s1602_s21 = smov (%p29_p1, %s27_s21), 0  ;;  %p226_p3 = pnand %p1375_p0, %p225_p2 }
   0x6   : > { %p271_p4 = scmp.lt.s32.totalorder (!%p226_p3), %s1452_s18, 1  ;;  %v302_v0 = vld [vmem:[%s1596_s3] sm:$0xff] (!%p226_p3)  ;;  %vm306_vm0 = vcmask (!%p226_p3), 31744   ;;  %v1462_v2 = vmov (!%p226_p3), 0.0   ;;  %v1463_v8 = vmov (!%p226_p3), 0   ;;  %vm310_vm1 = vcmask (!%p226_p3), 1043456  }
   0x7   : > { %229 = sbr.rel (%p226_p3) target bundleno = 286 (0x11e), region = 40  ;;  %v300_v1 = vld [vmem:[%s1595_s2] sm:$0xff] (!%p226_p3)  ;;  %381 = vmatprep.mubr.f32.mxu1 (!%p226_p3), %v1462_v2  ;;  %855 = vmatprep.mubr.f32.mxu0 (!%p226_p3), %v1462_v2  ;;  %v308_v3 = vsel (!%p226_p3), %vm306_vm0, %v302_v0, 0 }
   0x8   : > { %v783_v4 = vsel (!%p226_p3), %vm306_vm0, %v300_v1, 0  ;;  %v1254_v5 = vld [vmem:[%s1597_s4] sm:$0xff] (!%p226_p3)  ;;  %v1525_v6 = vand.u32 (!%p226_p3), 4294901760, %v308_v3  ;;  %1435 = vset.pattern.permute.xlu0 (!%p226_p3), %v1463_v8 }
   0x9   : > { %v1527_v7 = vand.u32 (!%p226_p3), 4294901760, %v783_v4  ;;  %1257 = vperm.xlu0 (!%p226_p3), %1435, %v1254_v5  }
   0xa   : > { %v1531_v9 = vsub.f32 (!%p226_p3), %v308_v3, %v1525_v6 }
   0xb   : > { %v1534_v10 = vsub.f32 (!%p226_p3), %v783_v4, %v1527_v7 }
   0xc   : > { %v384_v13 = vand.u32 (!%p226_p3), 4294901760, %v1531_v9 }
   0xd   : > { %v858_v14 = vand.u32 (!%p226_p3), 4294901760, %v1534_v10 }
   0xe   : > { %s1604_s18 = smov (!%p271_p4, %s1452_s18), 1  ;;  %v385_v21 = vsub.f32 %v1531_v9, %v384_v13 }
   0xf   : > { %s1384_s28 = sshll.u32 %s1604_s18, 3  ;;  %v859_v22 = vsub.f32 %v1534_v10, %v858_v14  ;;  %s1386_s10 = sshll.u32 %s1604_s18, 4 }
  0x10   : > { %s288_s6 = scalar_lea.vmem %s1594_s1, %s1384_s28  ;;  %s278_s9 = scalar_lea.vmem %s1593_s0, %s1384_s28  ;;  %v386_v29 = vand.u32 4294901760, %v385_v21 }
  0x11   : > { %v303_v11 = vld [vmem:[%s288_s6] sm:$0xff]  ;;  %v860_v30 = vand.u32 4294901760, %v859_v22  ;;  %s298_s13 = scalar_lea.vmem %s1598_s5, %s1386_s10 }
  0x12   : > { %v301_v12 = vld [vmem:[%s278_s9] sm:$0xff]  ;;  %v305_v15 = vcombine.high %v303_v11, %v303_v11  ;;  %v311_v17 = vsel %vm310_vm1, %v303_v11, 0 }
  0x13   : > { %v781_v16 = vcombine.high %v301_v12, %v301_v12  ;;  %v785_v18 = vsel %vm310_vm1, %v301_v12, 0  ;;  %v1546_v19 = vand.u32 4294901760, %v311_v17 }
  0x14   : > { %v1548_v20 = vand.u32 4294901760, %v785_v18  ;;  %v313_v23 = vsel %vm310_vm1, %v305_v15, 0 }
  0x15   : > { %v787_v24 = vsel %vm310_vm1, %v781_v16, 0  ;;  %v315_v25 = vand.u32 4294901760, %v313_v23  ;;  %v400_v27 = vsub.f32 %v311_v17, %v1546_v19 }
  0x16   : > { %v789_v26 = vand.u32 4294901760, %v787_v24  ;;  %v874_v28 = vsub.f32 %v785_v18, %v1548_v20 }
  0x17   : > { %316 = vmatprep.subr.mxu1 %v315_v25  ;;  %v394_v31 = vsub.f32 %v313_v23, %v315_v25  ;;  %v401_v33 = vand.u32 4294901760, %v400_v27 }
  0x18   : > { %790 = vmatprep.subr.mxu0 %v789_v26  ;;  %v868_v32 = vsub.f32 %v787_v24, %v789_v26  ;;  %v875_v34 = vand.u32 4294901760, %v874_v28  ;;  %318 = vmatpush1.msra.mxu1 %v1546_v19 }
  0x19   : > { %792 = vmatpush1.msra.mxu0 %v1548_v20  ;;  %387 = vmatmul.mubr.f32.vlgmr.msra.gmra.mrb[0].mxu1 %v386_v29  ;;  %v395_v35 = vand.u32 4294901760, %v394_v31  ;;  %v402_v37 = vsub.f32 %v400_v27, %v401_v33 }
  0x1a   : > { %861 = vmatmul.mubr.f32.vlgmr.msra.gmra.mrb[0].mxu0 %v860_v30  ;;  %v869_v36 = vand.u32 4294901760, %v868_v32  ;;  %v876_v38 = vsub.f32 %v874_v28, %v875_v34  ;;  %467 = vmatprep.mubr.f32.mxu1 %v1462_v2 }
  0x1b   : > { %941 = vmatprep.mubr.f32.mxu0 %v1462_v2  ;;  %v396_v39 = vsub.f32 %v394_v31, %v395_v35  ;;  %v403_v41 = vand.u32 4294901760, %v402_v37 }
  0x1c   : > { %v870_v40 = vsub.f32 %v868_v32, %v869_v36  ;;  %v877_v42 = vand.u32 4294901760, %v876_v38 }
  0x1d   : > { %v397_v43 = vand.u32 4294901760, %v396_v39 }
  0x1e   : > { %v871_v44 = vand.u32 4294901760, %v870_v40 }
  0x1f   : > { %398 = vmatprep.subr.mxu1 %v397_v43 }
  0x20   : > { %872 = vmatprep.subr.mxu0 %v871_v44  ;;  %404 = vmatpush1.msra.mxu1 %v403_v41 }
  0x21   : > { %878 = vmatpush1.msra.mxu0 %v877_v42  ;;  %469 = vmatmul.mubr.f32.vlgmr.msra.gmra.mrb[0].mxu1 %v1525_v6 }
  0x22   : > { %943 = vmatmul.mubr.f32.vlgmr.msra.gmra.mrb[0].mxu0 %v1527_v7  ;;  %477 = vmatprep.subr.mxu1 %v394_v31 }
  0x23   : > { %951 = vmatprep.subr.mxu0 %v868_v32  ;;  %480 = vmatpush1.msra.mxu1 %v400_v27 }
  0x24   : > { %543 = vmatprep.mubr.f32.mxu1 %v1462_v2  ;;  %954 = vmatpush1.msra.mxu0 %v874_v28 }
  0x25   : > { %1017 = vmatprep.mubr.f32.mxu0 %v1462_v2  ;;  %553 = vmatprep.subr.mxu1 %v315_v25 }
  0x26   : > { %1027 = vmatprep.subr.mxu0 %v789_v26 }
  0x29   : > { %546 = vmatmul.mubr.f32.vlgmr.msra.gmra.mrb[0].mxu1 %v1531_v9 }
  0x2a   : > { %1020 = vmatmul.mubr.f32.vlgmr.msra.gmra.mrb[0].mxu0 %v1534_v10  ;;  %555 = vmatpush1.msra.mxu1 %v1546_v19 }
  0x2b   : > { %618 = vmatprep.mubr.f32.mxu1 %v1462_v2  ;;  %1029 = vmatpush1.msra.mxu0 %v1548_v20 }
  0x2c   : > { %1092 = vmatprep.mubr.f32.mxu0 %v1462_v2  ;;  %631 = vmatprep.subr.mxu1 %v395_v35 }
  0x2d   : > { %1105 = vmatprep.subr.mxu0 %v869_v36 }
  0x31   : > { %622 = vmatmul.mubr.f32.vlgmr.msra.gmra.mrb[0].mxu1 %v384_v13 }
  0x32   : > { %1096 = vmatmul.mubr.f32.vlgmr.msra.gmra.mrb[0].mxu0 %v858_v14  ;;  %635 = vmatpush1.msra.mxu1 %v401_v33 }
  0x33   : > { %698 = vmatprep.mubr.f32.mxu1 %v1462_v2  ;;  %1109 = vmatpush1.msra.mxu0 %v875_v34 }
  0x34   : > { %1172 = vmatprep.mubr.f32.mxu0 %v1462_v2  ;;  %707 = vmatprep.subr.mxu1 %v315_v25 }
  0x35   : > { %1181 = vmatprep.subr.mxu0 %v789_v26 }
  0x39   : > { %700 = vmatmul.mubr.f32.vlgmr.msra.gmra.mrb[0].mxu1 %v1525_v6 }
  0x3a   : > { %1174 = vmatmul.mubr.f32.vlgmr.msra.gmra.mrb[0].mxu0 %v1527_v7  ;;  %709 = vmatpush1.msra.mxu1 %v1546_v19 }
  0x3b   : > { %772 = vmatprep.mubr.f32.mxu1 %v1462_v2  ;;  %1183 = vmatpush1.msra.mxu0 %v1548_v20 }
  0x3c   : > { %1246 = vmatprep.mubr.f32.mxu0 %v1462_v2 }
  0x41   : > { %774 = vmatmul.mubr.f32.vlgmr.msra.gmra.mrb[0].mxu1 %v1525_v6 }
  0x42   : > { %1248 = vmatmul.mubr.f32.vlgmr.msra.gmra.mrb[0].mxu0 %v1527_v7 }
  0x88   : > { %v1258_v45 = vpop.permute.xlu0 %1257 }
 0x114   : > { %v775_v46 = vpop.f32.mrb[0].mxu1 }
 0x115   : > { %v1249_v47 = vpop.f32.mrb[0].mxu0  ;;  %v777_v49 = vpop.f32.mrb[1].mxu1 }
 0x116   : > { %v1387_v48 = vadd.f32 %v1249_v47, %v775_v46  ;;  %v1251_v50 = vpop.f32.mrb[1].mxu0 }
 0x117   : > { %v1388_v51 = vadd.f32 %v1251_v50, %v777_v49 }
 0x118   : > { %v1260_v52 = vadd.f32 %v1387_v48, %v1258_v45 }
 0x119   : > { %v1261_v53 = vadd.f32 %v1388_v51, %v1258_v45 }
 0x11a   : > { %v1262_v54 = vmax.f32 %v1260_v52, 0.0 }
 0x11b   : > { %v1263_v55 = vmax.f32 %v1261_v53, 0.0 }
 0x11c   : > { %1264 = vst [vmem:[%s298_s13] sm:$0xff] %v1262_v54 }
 0x11d   : > { %1265 = vst [vmem:[%s298_s13 + $0x8] sm:$0xff] %v1263_v55 }
 0x11e PF: > { %s15_s20 = sadd.s32 1, %s1460_s20   ;;  %s1599_s18 = smov %s1456_s19 }
 0x11f   : > { %p12_p5 = scmp.ge.s32.totalorder %s15_s20, 4   ;;  %s1600_s19 = smov %s1602_s21 }
 0x121   :  { %14 = sbr.rel (!%p12_p5) target bundleno = 2 (0x2), region = 73 }

</bundles_post_ra>
